<compile_context>
chip_gen: v5e
topology: v5e:2x2
jax: 0.10.0
libtpu: 0.0.40
codegen_flags: <defaults>
</compile_context>

<pallas_src>
import functools
import math

import jax
import jax.numpy as jnp
from jax.experimental import pallas as pl
from jax.experimental.pallas import tpu as pltpu


def _mha_kernel(q_ref, v_ref, wvt_ref, bv_ref, out_ref, logits_ref, *,
                seq_len, sigmoid_weights):
    TB, H, V = q_ref.shape
    L = seq_len

    queries = q_ref[...]                       # (TB, H, V)   bf16 (precomputed)
    vals2 = v_ref[...]                         # (TB*L, V)    bf16 (flattened)
    wvt = wvt_ref[...]                         # (V, V)       bf16 (pre-transposed)
    bv = bv_ref[...]                           # (1, V)       f32

    # value_proj(values): one flat (TB*L, V) x (V, V) bf16 matmul, f32 accum.
    proj2 = jnp.dot(vals2, wvt, preferred_element_type=jnp.float32) + bv
    proj = proj2.reshape(TB, L, V)             # (TB, L, V)   f32
    proj_bf = proj.astype(jnp.bfloat16)        # MXU operand for the two einsums

    # logits (lane-dense layout): einsum('bhv,blv->bhl', queries, proj)
    logits_hl = jax.lax.dot_general(
        queries, proj_bf,
        dimension_numbers=(((2,), (2,)), ((0,), (0,))),
        preferred_element_type=jnp.float32)    # (TB, H, L)   f32

    x = jax.nn.sigmoid(logits_hl) if sigmoid_weights else logits_hl

    # softmax over L (torch dim=-2 of (B, L, H) == last axis of (TB, H, L)).
    # Elementwise math kept in f32 (v5e has no bf16 VPU/EUP path).
    m = jnp.max(x, axis=-1, keepdims=True)
    e = jnp.exp(x - m)
    s = jnp.sum(e, axis=-1, keepdims=True)
    attn = e * pl.reciprocal(s, approx=True)   # EUP slot; ~1e-3 rel error, inference-OK

    # out (lane-dense layout): einsum('bhl,blv->bhv', attn, proj)
    out_hv = jax.lax.dot_general(
        attn.astype(jnp.bfloat16), proj_bf,
        dimension_numbers=(((2,), (1,)), ((0,), (0,))),
        preferred_element_type=jnp.float32)    # (TB, H, V)   f32

    out_ref[...] = out_hv.astype(out_ref.dtype)
    logits_ref[...] = logits_hl.astype(logits_ref.dtype)


def _vmem_limit_bytes():
    """Scoped-VMEM limit that is safe on v7x (64 MiB) and generous on 128 MiB parts."""
    try:
        cap = pltpu.get_tpu_info().vmem_capacity_bytes
    except Exception:
        cap = 64 * 1024 * 1024  # assume the smallest (v7x) part if unknown
    return max(32 * 1024 * 1024, min(cap - 16 * 1024 * 1024, 100 * 1024 * 1024))


def _per_batch_vmem_bytes(L, V, H):
    """Rough VMEM bytes per batch element: double-buffered blocks + intermediates."""
    def pad(n, m):
        return -(-n // m) * m
    lanes_v = pad(V, 128)
    lanes_l = pad(L, 128)
    blocks = 2 * (L * lanes_v * 2              # values rows (bf16, flattened slab)
                  + pad(H, 16) * lanes_v * 2   # queries (bf16)
                  + pad(H, 8) * lanes_v * 4    # out block (f32)
                  + pad(H, 8) * lanes_l * 4)   # logits block (f32)
    inter = (pad(L, 8) * lanes_v * 4           # proj (f32)
             + pad(L, 16) * lanes_v * 2        # proj (bf16)
             + 4 * pad(H, 8) * lanes_l * 4     # logits / x / e / attn (f32)
             + pad(H, 16) * lanes_l * 2        # attn (bf16)
             + pad(H, 8) * lanes_v * 4)        # out_hv (f32)
    return blocks + inter


def multi_head_attention(key, values, params, *, num_heads,
                         sigmoid_weights=False, block_b=None):
    """key: (B, key_size) f32; values: (B, L, value_size) f32.

    Returns (out, logits) in the torch layouts: out (B, value_size, num_heads),
    logits (B, L, num_heads).
    """
    wq, bq, wv, bv = params
    B, K = key.shape
    _, L, V = values.shape
    H = num_heads
    assert wq.shape == (V * H, K) and wv.shape == (V, V)

    vmem_limit = _vmem_limit_bytes()
    per_batch = _per_batch_vmem_bytes(L, V, H)

    # Batch tile: VMEM-budget driven (biggest wall-clock lever at these shapes).
    mult = 8 // math.gcd(L, 8)                 # keep (TB*L) % 8 == 0 for the values block
    if block_b is None:
        budget = (vmem_limit * 3) // 5         # leave headroom for pipeline/regalloc
        tb = max(1, budget // per_batch)
        tb = min(tb, 1024)
        if tb >= B:
            tb = B                             # small batch: one step covers everything
        else:
            tb = max(1, min(tb, -(-B // 2)))   # keep >= 2 grid steps for v7x's 2 TCs
        block_b = tb
    TB = block_b
    if TB != B and TB % mult:
        TB = -(-TB // mult) * mult             # sublane-align the flattened values block
    num_blocks = -(-B // TB)
    B_pad = num_blocks * TB

    # Hoisted query projection: one batched XLA matmul instead of a degenerate
    # M=1 matmul per grid step inside the kernel.
    queries = (key @ wq.T + bq).reshape(B, H, V).astype(jnp.float32)

    # Pad batch to a multiple of TB (zeros -> finite garbage rows, sliced off below).
    if B_pad != B:
        pad = B_pad - B
        queries = jnp.pad(queries, ((0, pad), (0, 0), (0, 0)))
        values_p = jnp.pad(values, ((0, pad), (0, 0), (0, 0)))
    else:
        values_p = values

    # bf16 HBM streams for the MXU operands; bias stays f32 (added to f32 accum).
    queries_bf = queries.astype(jnp.bfloat16)                       # (B_pad, H, V)
    values_2d = values_p.reshape(B_pad * L, V).astype(jnp.bfloat16)  # (B_pad*L, V)
    wvt = jnp.asarray(wv).T.astype(jnp.bfloat16)                    # (V, V), pre-transposed
    bv2 = jnp.asarray(bv, jnp.float32).reshape(1, V)

    grid = (num_blocks,)

    cost = pl.CostEstimate(
        flops=2 * B_pad * (L * V * V + 2 * H * L * V),
        transcendentals=B_pad * H * L,
        bytes_accessed=(2 * (B_pad * L * V + B_pad * H * V + V * V)   # bf16 inputs
                        + 4 * (B_pad * H * V + B_pad * H * L + V)),   # f32 outputs + bias
    )

    kernel = functools.partial(_mha_kernel, seq_len=L,
                               sigmoid_weights=sigmoid_weights)

    out_hv, logits_hl = pl.pallas_call(
        kernel,
        out_shape=(
            jax.ShapeDtypeStruct((B_pad, H, V), jnp.float32),   # V on lanes
            jax.ShapeDtypeStruct((B_pad, H, L), jnp.float32),   # L on lanes
        ),
        grid_spec=pltpu.PrefetchScalarGridSpec(
            num_scalar_prefetch=0,
            grid=grid,
            in_specs=[
                pl.BlockSpec((TB, H, V), lambda b: (b, 0, 0)),      # queries (bf16)
                pl.BlockSpec((TB * L, V), lambda b: (b, 0)),        # values, flat (bf16)
                pl.BlockSpec((V, V), lambda b: (0, 0)),             # Wv^T (bf16)
                pl.BlockSpec((1, V), lambda b: (0, 0)),             # b_v (f32)
            ],
            out_specs=[
                pl.BlockSpec((TB, H, V), lambda b: (b, 0, 0)),      # out (B,H,V)
                pl.BlockSpec((TB, H, L), lambda b: (b, 0, 0)),      # logits (B,H,L)
            ],
        ),
        compiler_params=pltpu.CompilerParams(
            dimension_semantics=("parallel",),
            vmem_limit_bytes=int(vmem_limit),
        ),
        cost_estimate=cost,
    )(queries_bf, values_2d, wvt, bv2)

    # Slice off batch padding; final transposes to the torch layout are one
    # cheap XLA op each on lane-dense kernel outputs.
    out = jnp.transpose(out_hv[:B], (0, 2, 1))        # (B, V, H)
    logits = jnp.transpose(logits_hl[:B], (0, 2, 1))  # (B, L, H)
    return out, logits


def _reference(key, values, params, *, num_heads, sigmoid_weights=False):
    wq, bq, wv, bv = params
    B, L, V = values.shape
    queries = (key @ wq.T + bq).reshape(B, num_heads, V)
    proj = values @ wv.T + bv
    logits = jnp.einsum('blv,bhv->blh', proj, queries)
    x = jax.nn.sigmoid(logits) if sigmoid_weights else logits
    attn = jax.nn.softmax(x, axis=-2)
    out = jnp.einsum('blh,blv->bhv', attn, proj)
    return jnp.transpose(out, (0, 2, 1)), logits


if __name__ == "__main__":
    # Small, module-consistent shapes.
    B, L = 2, 8
    key_size, value_size, num_heads = 16, 32, 4

    rng = jax.random.PRNGKey(0)
    k_key, k_vals, k_wq, k_bq, k_wv, k_bv = jax.random.split(rng, 6)

    key = jax.random.normal(k_key, (B, key_size), dtype=jnp.float32)
    values = jax.random.normal(k_vals, (B, L, value_size), dtype=jnp.float32)

    # PyTorch Linear weight layout: (out_features, in_features).
    wq = 0.1 * jax.random.normal(k_wq, (value_size * num_heads, key_size), jnp.float32)
    bq = 0.1 * jax.random.normal(k_bq, (value_size * num_heads,), jnp.float32)
    wv = 0.1 * jax.random.normal(k_wv, (value_size, value_size), jnp.float32)
    bv = 0.1 * jax.random.normal(k_bv, (value_size,), jnp.float32)
    params = (wq, bq, wv, bv)

    for sig in (False, True):
        out, logits = multi_head_attention(
            key, values, params, num_heads=num_heads, sigmoid_weights=sig)
        out = jax.block_until_ready(out)
        logits = jax.block_until_ready(logits)

        ref_out, ref_logits = _reference(
            key, values, params, num_heads=num_heads, sigmoid_weights=sig)

        assert out.shape == (B, value_size, num_heads)
        assert logits.shape == (B, L, num_heads)
        # bf16 MXU operands (f32 accumulation) -> loosened tolerances vs the
        # pure-f32 reference; the approx reciprocal adds ~1e-3 on `out`.
        assert jnp.allclose(logits, ref_logits, atol=3e-2, rtol=3e-2)
        assert jnp.allclose(out, ref_out, atol=5e-2, rtol=5e-2)

    print("KERNEL_OK")
</pallas_src>

<mosaic_0001>
module attributes {stable_mosaic.version = 11 : i64} {
  func.func @_mha_kernel(%arg0: i32, %arg1: memref<2x4x32xbf16, #tpu.memory_space<vmem>>, %arg2: memref<16x32xbf16, #tpu.memory_space<vmem>>, %arg3: memref<32x32xbf16, #tpu.memory_space<vmem>>, %arg4: memref<1x32xf32, #tpu.memory_space<vmem>>, %arg5: memref<2x4x32xf32, #tpu.memory_space<vmem>>, %arg6: memref<2x4x8xf32, #tpu.memory_space<vmem>>) attributes {dimension_semantics = [#tpu.dimension_semantics<parallel>], iteration_bounds = array<i64: 1>, scalar_prefetch = 0 : i64, scratch_operands = 0 : i64, tpu.core_type = #tpu.core_type<tc>, window_params = [{transform_indices = @transform_0, window_bounds = array<i64: 2, 4, 32>}, {transform_indices = @transform_1, window_bounds = array<i64: 16, 32>}, {pipeline_mode = #tpu.pipeline_mode<synchronous>, transform_indices = @transform_2, window_bounds = array<i64: 32, 32>}, {pipeline_mode = #tpu.pipeline_mode<synchronous>, transform_indices = @transform_3, window_bounds = array<i64: 1, 32>}, {transform_indices = @transform_4, window_bounds = array<i64: 2, 4, 32>}, {transform_indices = @transform_5, window_bounds = array<i64: 2, 4, 8>}]} {
    %c0 = arith.constant 0 : index
    %c0_0 = arith.constant 0 : index
    %c0_1 = arith.constant 0 : index
    %0 = vector.load %arg1[%c0, %c0_0, %c0_1] : memref<2x4x32xbf16, #tpu.memory_space<vmem>>, vector<2x4x32xbf16>
    %c0_2 = arith.constant 0 : index
    %c0_3 = arith.constant 0 : index
    %1 = vector.load %arg2[%c0_2, %c0_3] : memref<16x32xbf16, #tpu.memory_space<vmem>>, vector<16x32xbf16>
    %c0_4 = arith.constant 0 : index
    %c0_5 = arith.constant 0 : index
    %2 = vector.load %arg3[%c0_4, %c0_5] : memref<32x32xbf16, #tpu.memory_space<vmem>>, vector<32x32xbf16>
    %c0_6 = arith.constant 0 : index
    %c0_7 = arith.constant 0 : index
    %3 = vector.load %arg4[%c0_6, %c0_7] : memref<1x32xf32, #tpu.memory_space<vmem>>, vector<1x32xf32>
    %cst = arith.constant dense<0.000000e+00> : vector<16x32xf32>
    %4 = tpu.matmul %1, %2, %cst {dimension_numbers = #tpu.dot_dimension_numbers<[1], [0], [0], [1], [0, 0, 1, 1], [], []>} : vector<16x32xbf16>, vector<32x32xbf16>, vector<16x32xf32> -> vector<16x32xf32>
    %5 = vector.broadcast %3 : vector<1x32xf32> to vector<16x32xf32>
    %6 = arith.addf %4, %5 : vector<16x32xf32>
    %7 = vector.shape_cast %6 : vector<16x32xf32> to vector<2x8x32xf32>
    %8 = arith.truncf %7 : vector<2x8x32xf32> to vector<2x8x32xbf16>
    %cst_8 = arith.constant dense<0.000000e+00> : vector<2x4x8xf32>
    %9 = tpu.matmul %0, %8, %cst_8 {dimension_numbers = #tpu.dot_dimension_numbers<[2], [2], [1], [1], [0, 0, 0, 1, 1, 1], [0], [0]>} : vector<2x4x32xbf16>, vector<2x8x32xbf16>, vector<2x4x8xf32> -> vector<2x4x8xf32>
    %cst_9 = arith.constant dense<0xFF800000> : vector<2x4xf32>
    %10 = vector.multi_reduction <maximumf>, %9, %cst_9 [2] : vector<2x4x8xf32> to vector<2x4xf32>
    %11 = vector.shape_cast %10 : vector<2x4xf32> to vector<2x4x1xf32>
    %12 = vector.broadcast %11 : vector<2x4x1xf32> to vector<2x4x8xf32>
    %13 = arith.subf %9, %12 : vector<2x4x8xf32>
    %14 = math.exp %13 : vector<2x4x8xf32>
    %cst_10 = arith.constant dense<0.000000e+00> : vector<2x4xf32>
    %15 = vector.multi_reduction <add>, %14, %cst_10 [2] : vector<2x4x8xf32> to vector<2x4xf32>
    %16 = vector.shape_cast %15 : vector<2x4xf32> to vector<2x4x1xf32>
    %17 = tpu.reciprocal %16 {approx = true} : vector<2x4x1xf32> -> vector<2x4x1xf32>
    %18 = vector.broadcast %17 : vector<2x4x1xf32> to vector<2x4x8xf32>
    %19 = arith.mulf %14, %18 : vector<2x4x8xf32>
    %20 = arith.truncf %19 : vector<2x4x8xf32> to vector<2x4x8xbf16>
    %cst_11 = arith.constant dense<0.000000e+00> : vector<2x4x32xf32>
    %21 = tpu.matmul %20, %8, %cst_11 {dimension_numbers = #tpu.dot_dimension_numbers<[2], [1], [1], [2], [0, 0, 0, 1, 1, 2], [0], [0]>} : vector<2x4x8xbf16>, vector<2x8x32xbf16>, vector<2x4x32xf32> -> vector<2x4x32xf32>
    %c0_12 = arith.constant 0 : index
    %c0_13 = arith.constant 0 : index
    %c0_14 = arith.constant 0 : index
    %22 = vector.load %arg5[%c0_12, %c0_13, %c0_14] : memref<2x4x32xf32, #tpu.memory_space<vmem>>, vector<2x4x32xf32>
    tpu.vector_store %arg5[%c0_12, %c0_13, %c0_14], %21 {strides = array<i32>} : memref<2x4x32xf32, #tpu.memory_space<vmem>>, vector<2x4x32xf32>,
    %c0_15 = arith.constant 0 : index
    %c0_16 = arith.constant 0 : index
    %c0_17 = arith.constant 0 : index
    %23 = vector.load %arg6[%c0_15, %c0_16, %c0_17] : memref<2x4x8xf32, #tpu.memory_space<vmem>>, vector<2x4x8xf32>
    tpu.vector_store %arg6[%c0_15, %c0_16, %c0_17], %9 {strides = array<i32>} : memref<2x4x8xf32, #tpu.memory_space<vmem>>, vector<2x4x8xf32>,
    return
  }
  func.func @transform_0(%arg0: i32) -> (i32, i32, i32) {
    %c0_i32 = arith.constant 0 : i32
    %c0_i32_0 = arith.constant 0 : i32
    %c0_i32_1 = arith.constant 0 : i32
    return %arg0, %c0_i32, %c0_i32_0 : i32, i32, i32
  }
  func.func @transform_1(%arg0: i32) -> (i32, i32) {
    %c0_i32 = arith.constant 0 : i32
    %c0_i32_0 = arith.constant 0 : i32
    return %arg0, %c0_i32 : i32, i32
  }
  func.func @transform_2(%arg0: i32) -> (i32, i32) {
    %c0_i32 = arith.constant 0 : i32
    %c0_i32_0 = arith.constant 0 : i32
    %c0_i32_1 = arith.constant 0 : i32
    return %c0_i32, %c0_i32_0 : i32, i32
  }
  func.func @transform_3(%arg0: i32) -> (i32, i32) {
    %c0_i32 = arith.constant 0 : i32
    %c0_i32_0 = arith.constant 0 : i32
    %c0_i32_1 = arith.constant 0 : i32
    return %c0_i32, %c0_i32_0 : i32, i32
  }
  func.func @transform_4(%arg0: i32) -> (i32, i32, i32) {
    %c0_i32 = arith.constant 0 : i32
    %c0_i32_0 = arith.constant 0 : i32
    %c0_i32_1 = arith.constant 0 : i32
    return %arg0, %c0_i32, %c0_i32_0 : i32, i32, i32
  }
  func.func @transform_5(%arg0: i32) -> (i32, i32, i32) {
    %c0_i32 = arith.constant 0 : i32
    %c0_i32_0 = arith.constant 0 : i32
    %c0_i32_1 = arith.constant 0 : i32
    return %arg0, %c0_i32, %c0_i32_0 : i32, i32, i32
  }
}

</mosaic_0001>

<bundles_post_ra>
// kernel: tpu_custom_call.1
= control target key start
LH: loop header
LB: loop body
LE: loop exit
PB: predicated region body
PF: predicated region fallthrough
CT: control target
= control target key end

     0   :  { %11 = vsyncpa [#allocation3], 0  ;;  %s508_s0 = inlined_call_operand.hbm [shape: bf16[2,4,32], index: 0, kind: input, shape index: {}]   ;;  %s509_s1 = inlined_call_operand.hbm [shape: bf16[16,32], index: 1, kind: input, shape index: {}]   ;;  %s510_s2 = inlined_call_operand.hbm [shape: bf16[32,32], index: 2, kind: input, shape index: {}]   ;;  %s511_s3 = inlined_call_operand.vmem [shape: f32[1,32], index: 3, kind: input, shape index: {}]   ;;  %s512_s4 = inlined_call_operand.hbm [shape: f32[2,4,32], index: 4, kind: output, shape index: {0}]   ;;  %s513_s5 = inlined_call_operand.hbm [shape: f32[2,4,8], index: 5, kind: output, shape index: {1}]  }
   0x1   :  { %12 = vsyncpa [#allocation6], 0 }
   0x2   :  { %13 = vsyncpa [#allocation4], 0  ;;  %s32_s20 = sshll.u32 %s509_s1, 4  ;;  %s33_s20 = int_to_ptr.hbm [resolvable:$true] %s32_s20 }
   0x3   :  { %14 = vsyncpa [#allocation10], 0  ;;  %s428_s21 = smov [#allocation5]   ;;  %s19_s25 = sshll.u32 %s508_s0, 4  ;;  %s20_s25 = int_to_ptr.hbm [resolvable:$true] %s19_s25 }
   0x4   :  { %s34_s22 = sshll.u32 %s428_s21, 4  ;;  %s429_s26 = smov 64   ;;  %s35_s22 = int_to_ptr.vmem [resolvable:$true] %s34_s22 }
   0x5   :  { %s430_s27 = smov 4   ;;  %s431_s28 = smov [#allocation2]  }
   0x6   :  { %40 = dma.hbm_to_vmem [thread:$0]  %s33_s20, 128, %s35_s22, [#allocation6], %s429_s26, %s429_s26, %s430_s27  }
   0x7   :  { %s21_s29 = sshll.u32 %s431_s28, 4  ;;  %s432_s1 = smov 32   ;;  %s22_s29 = int_to_ptr.vmem [resolvable:$true] %s21_s29 }
   0x8   :  { %s433_s30 = smov 2   ;;  %s45_s8 = sshll.u32 %s510_s2, 4  ;;  %s46_s8 = int_to_ptr.hbm [resolvable:$true] %s45_s8 }
   0x9   :  { %27 = dma.hbm_to_vmem [thread:$0]  %s20_s25, 64, %s22_s29, [#allocation3], %s432_s1, %s432_s1, %s433_s30  }
   0xa   :  { %s434_s9 = smov [#allocation7]  }
   0xb   :  { %s47_s0 = sshll.u32 %s434_s9, 4  ;;  %s48_s0 = int_to_ptr.vmem [resolvable:$true] %s47_s0 }
   0xc   :  { %53 = dma.hbm_to_vmem [thread:$0]  %s46_s8, 256, %s48_s0, [#allocation6], %s429_s26, %s429_s26, %s430_s27  }
   0xd   :  { %420 = dma.done.wait [#allocation3], 64  }
   0xe   :  { %421 = vsyncadd [#allocation3], 4294967232 }
   0xf   :  { %422 = dma.done.wait [#allocation6], 384  }
  0x10   :  { %423 = vsyncadd [#allocation6], 4294966912  ;;  %v281_v0 = vld [vmem:[#allocation7 + $0x8] sm:$0xff]  ;;  %v280_v1 = vld [vmem:[#allocation7] sm:$0xff]  ;;  %vm98_vm0 = vcmask 261120   ;;  %vm185_vm1 = vcmask 1043456  }
  0x11   :  { %108 = vmatpush.bf16.msra.mxu0 %v281_v0  ;;  %v279_v2 = vld [vmem:[#allocation5] sm:$0xff]  ;;  %v291_v3 = vld [vmem:[%s511_s3] ss:$0 sm:$0xff]  ;;  %v70_v15 = vld [vmem:[#allocation2 + $0x2] sm:$0x3]  ;;  %vm156_vm2 = vcmask 60416  }
  0x12   :  { %v69_v11 = vld [vmem:[#allocation2] sm:$0x3]  ;;  %vm181_vm3 = vcmask 64512   ;;  %s435_s3 = smov [#allocation9]   ;;  %s243_s14 = sshll.u32 %s513_s5, 4  ;;  %vm219_vm4 = vcmask 257024   ;;  %s244_s14 = int_to_ptr.hbm [resolvable:$true] %s243_s14 }
  0x13   :  { %s241_s11 = sshll.u32 %s435_s3, 4  ;;  %s436_s15 = smov [#allocation8]   ;;  %s242_s11 = int_to_ptr.vmem [resolvable:$true] %s241_s11 }
  0x14   :  { %s228_s16 = sshll.u32 %s436_s15, 4  ;;  %s230_s19 = sshll.u32 %s512_s4, 4  ;;  %s229_s16 = int_to_ptr.vmem [resolvable:$true] %s228_s16  ;;  %s231_s19 = int_to_ptr.hbm [resolvable:$true] %s230_s19 }
  0x15   :  { %109 = vmatpush.bf16.msra.mxu0 %v280_v1 }
  0x18   :  { %274 = vmatmul.msk.bf16.vlgmr.msra.gmra.mxu0 %vm98_vm0, %v279_v2 }
  0x95   :  { %v111_v4 = vpop.f32.mrf.mxu0 }
  0x96   :  { %v112_v5 = vadd.f32 %v291_v3, %v111_v4 }
  0x98   :  { %v116_v6 = vpack.c.bf16 %v112_v5, %v112_v5 }
  0x9a   :  { %v122_v7 = vsel %vm98_vm0, %v116_v6, 0  ;;  %v186_v8 = vsel %vm185_vm1, %v116_v6, 0 }
  0x9b   :  { %131 = vmatpush.bf16.xpose.msra.mxu1 %v122_v7  ;;  %195 = vmatpush.bf16.msra.mxu3 %v186_v8 }
  0x9d   :  { %v113_v9 = vpop.f32.mrf.mxu0 }
  0x9e   :  { %v114_v10 = vadd.f32 %v291_v3, %v113_v9 }
  0xa0   :  { %v117_v12 = vpack.c.bf16 %v114_v10, %v114_v10 }
  0xa2   :  { %275 = vmatmul.msk.bf16.vlgmr.msra.gmra.mxu1 %vm98_vm0, %v69_v11  ;;  %v141_v13 = vsel %vm98_vm0, %v117_v12, 0  ;;  %v204_v14 = vsel %vm185_vm1, %v117_v12, 0 }
  0xa3   :  { %150 = vmatpush.bf16.xpose.msra.mxu2 %v141_v13  ;;  %213 = vmatpush.bf16.msrb.mxu3 %v204_v14 }
  0xaa   :  { %276 = vmatmul.msk.bf16.vlgmr.msra.gmra.mxu2 %vm98_vm0, %v70_v15 }
 0x11f   :  { %v133_v16 = vpop.f32.mrf.mxu1 }
 0x120   :  { %222 = vst.msk [vmem:[#allocation9] sm:$0xf] %vm156_vm2, %v133_v16  ;;  %v157_v17 = vsel %vm156_vm2, %v133_v16, -inf }
 0x121   :  { %158 = vmax.xlane.f32.xlu0 %v157_v17 }
 0x127   :  { %v135_v18 = vpop.f32.mrf.mxu1 }
 0x12d   :  { %v152_v19 = vpop.f32.mrf.mxu2 }
 0x12e   :  { %223 = vst.msk [vmem:[#allocation9 + $0x4] sm:$0xf] %vm156_vm2, %v152_v19  ;;  %v160_v20 = vsel %vm156_vm2, %v152_v19, -inf }
 0x12f   :  { %161 = vmax.xlane.f32.xlu0 %v160_v20  ;;  %249 = dma.vmem_to_hbm [thread:$0]  %s242_s11, 128, %s244_s14, [#allocation10], %s429_s26, %s429_s26, %s430_s27  }
 0x135   :  { %v154_v21 = vpop.f32.mrf.mxu2 }
 0x194   :  { %v159_v22 = vpop.xlane.xlu0 %158 }
 0x195   :  { %v163_v23 = vsub.f32 %v133_v16, %v159_v22 }
 0x197   :  { %v165_v24 = vmul.f32 1.442695, %v163_v23 }
 0x199   :  { %292 = vpow2.f32 %v165_v24 }
 0x19f   :  { %v293_v25 = vpop.eup %292 }
 0x1a0   :  { %v169_v26 = vsel %vm156_vm2, %v293_v25, 0.0 }
 0x1a1   :  { %170 = vadd.xlane.f32.xlu1 %v169_v26 }
 0x1a2   :  { %v162_v27 = vpop.xlane.xlu0 %161 }
 0x1a3   :  { %v164_v28 = vsub.f32 %v152_v19, %v162_v27 }
 0x1a5   :  { %v167_v29 = vmul.f32 1.442695, %v164_v28 }
 0x1a7   :  { %294 = vpow2.f32 %v167_v29 }
 0x1ad   :  { %v295_v30 = vpop.eup %294 }
 0x1ae   :  { %v172_v31 = vsel %vm156_vm2, %v295_v30, 0.0 }
 0x1af   :  { %173 = vadd.xlane.f32.xlu1 %v172_v31 }
 0x214   :  { %v171_v32 = vpop.xlane.xlu1 %170 }
 0x215   :  { %296 = vrcp.f32 %v171_v32 }
 0x21b   :  { %v297_v33 = vpop.eup %296 }
 0x21c   :  { %v177_v34 = vmul.f32 %v297_v33, %v293_v25 }
 0x21e   :  { %v179_v35 = vpack.c.bf16 %v177_v34, %v177_v34 }
 0x220   :  { %277 = vmatmul.msk.bf16.vlgmr.msra.gmra.mxu3 %vm181_vm3, %v179_v35 }
 0x222   :  { %v174_v36 = vpop.xlane.xlu1 %173 }
 0x223   :  { %298 = vrcp.f32 %v174_v36 }
 0x229   :  { %v299_v37 = vpop.eup %298 }
 0x22a   :  { %v178_v38 = vmul.f32 %v299_v37, %v295_v30 }
 0x22c   :  { %v180_v39 = vpack.c.bf16 %v178_v38, %v178_v38 }
 0x230   :  { %278 = vmatmul.msk.bf16.vlgmr.msrb.gmra.mxu3 %vm181_vm3, %v180_v39 }
 0x2a3   :  { %v197_v40 = vpop.f32.mrf.mxu3 }
 0x2a4   :  { %220 = vst.msk [vmem:[#allocation8] sm:$0xf] %vm219_vm4, %v197_v40 }
 0x2ab   :  { %v199_v41 = vpop.f32.mrf.mxu3 }
 0x2b3   :  { %v215_v42 = vpop.f32.mrf.mxu3 }
 0x2b4   :  { %221 = vst.msk [vmem:[#allocation8 + $0x4] sm:$0xf] %vm219_vm4, %v215_v42 }
 0x2b5   :  { %236 = dma.vmem_to_hbm [thread:$0]  %s229_s16, 128, %s231_s19, [#allocation4], %s429_s26, %s429_s26, %s430_s27  }
 0x2bb   :  { %v217_v43 = vpop.f32.mrf.mxu3 }
 0x2bc   :  { %424 = dma.done.wait [#allocation4], 128  }
 0x2bd   :  { %425 = vsyncadd [#allocation4], 4294967168 }
 0x2be   :  { %426 = dma.done.wait [#allocation10], 128  }
 0x2bf   :  { %427 = vsyncadd [#allocation10], 4294967168 }
 0x2c0   :  { %258 = vsyncpa [#allocation3], 1 }
 0x2c1   :  { %259 = vsyncpa [#allocation6], 1 }
 0x2c2   :  { %260 = vsyncpa [#allocation4], 1 }
 0x2c3   :  { %261 = vsyncpa [#allocation10], 1 }

</bundles_post_ra>
